<compile_context>
chip_gen: v5e
topology: v5e:2x2
jax: 0.10.0
libtpu: 0.0.40
codegen_flags: <defaults>
</compile_context>

<pallas_src>
import functools

import jax
import jax.numpy as jnp
from jax import lax
from jax.experimental import pallas as pl
from jax.experimental.pallas import tpu as pltpu

_LANE = 128  # pad output-feature axes to one full vreg lane width


# --------------------------------------------------------------------------- #
# Kernel
# --------------------------------------------------------------------------- #
def _make_kernel(f_in):
    """Close over static f_in so the stacked parameter buffer can be sliced
    with static, (mostly) tile-aligned offsets."""
    w2_lo = f_in
    w2_hi = f_in + _LANE
    b1_row = w2_hi
    b2_row = w2_hi + 1

    def kernel(x_ref, h_ref, ew_ref, wb_ref, o_ref):
        # Per-graph tiles (leading batch axis squeezed by the BlockSpecs).
        x = x_ref[...]            # (N, f_in) f32
        H = h_ref[...]            # (N, E)    f32 incidence (duplicates accumulate)
        ew = ew_ref[...]          # (1, E)    f32 hyperedge weights

        # Stacked parameters (shared across the batch grid, DMA'd once).
        w1 = wb_ref[0:w2_lo, :]              # (f_in, 128)
        w2 = wb_ref[w2_lo:w2_hi, :]          # (128, 128)
        b1 = wb_ref[b1_row:b1_row + 1, :]    # (1, 128)
        b2 = wb_ref[b2_row:b2_row + 1, :]    # (1, 128)

        # ---- propagation matrix L = D^{-1} H W B H^T, built in-kernel (f32) ----
        Dw = jnp.sum(H * ew, axis=1, keepdims=True)       # weighted node degree (N,1)
        Bdeg = jnp.sum(H, axis=0, keepdims=True)          # hyperedge degree     (1,E)
        dinv = jnp.where(Dw > 0.0, 1.0, 0.0) / jnp.where(Dw > 0.0, Dw, 1.0)
        binv = jnp.where(Bdeg > 0.0, ew, 0.0) / jnp.where(Bdeg > 0.0, Bdeg, 1.0)
        Hs = dinv * H * binv                               # (N, E)
        L = lax.dot_general(Hs, H, (((1,), (1,)), ((), ())),
                            preferred_element_type=jnp.float32)      # (N, N)

        # ---- layer 1: HypergraphConv + ReLU ----
        xw = jnp.dot(x, w1, preferred_element_type=jnp.float32)      # (N, 128)
        h1 = jnp.maximum(
            jnp.dot(L, xw, preferred_element_type=jnp.float32) + b1, 0.0)
        # dropout(p=0.1): identity (eval semantics)

        # ---- layer 2: HypergraphConv + ReLU ----
        xw = jnp.dot(h1, w2, preferred_element_type=jnp.float32)     # (N, 128)
        o_ref[...] = jnp.maximum(
            jnp.dot(L, xw, preferred_element_type=jnp.float32) + b2, 0.0)
        # dropout(p=0.1): identity (eval semantics)

    return kernel


def _fused_gnn_lep(x, H, ew, wb):
    """One pallas_call for the whole batch; grid=(B,), one graph per step."""
    B, N, f_in = x.shape
    E = H.shape[-1]

    flops = B * 2 * (N * E * N            # L = Hs @ H^T
                     + N * f_in * _LANE   # X @ W1
                     + 2 * N * N * _LANE  # two L @ (.) propagations
                     + N * _LANE * _LANE)  # H1 @ W2
    bytes_accessed = 4 * (x.size + H.size + ew.size + wb.size + B * N * _LANE)

    return pl.pallas_call(
        _make_kernel(f_in),
        out_shape=jax.ShapeDtypeStruct((B, N, _LANE), jnp.float32),
        grid=(B,),
        in_specs=[
            pl.BlockSpec((None, N, f_in), lambda b: (b, 0, 0)),   # x  per graph
            pl.BlockSpec((None, N, E), lambda b: (b, 0, 0)),      # H  per graph
            pl.BlockSpec((None, 1, E), lambda b: (b, 0, 0)),      # edge weights
            pl.BlockSpec(wb.shape, lambda b: (0, 0)),             # params, resident
        ],
        out_specs=pl.BlockSpec((None, N, _LANE), lambda b: (b, 0, 0)),
        compiler_params=pltpu.CompilerParams(
            dimension_semantics=("parallel",)),                   # v7x: 2 TCs split B
        cost_estimate=pl.CostEstimate(flops=int(flops), transcendentals=0,
                                      bytes_accessed=int(bytes_accessed)),
    )(x, H, ew, wb)


# --------------------------------------------------------------------------- #
# Params & wrapper
# --------------------------------------------------------------------------- #
def init_params(key, num_features, hidden_dim):
    k1, k2, k3, k4 = jax.random.split(key, 4)
    # PyG HypergraphConv: lin = Linear(in, out, bias=False); separate bias(out)
    w1 = jax.random.normal(k1, (num_features, hidden_dim), jnp.float32)
    w1 = w1 * (1.0 / jnp.sqrt(num_features))
    b1 = 0.01 * jax.random.normal(k2, (hidden_dim,), jnp.float32)
    w2 = jax.random.normal(k3, (hidden_dim, hidden_dim * 2), jnp.float32)
    w2 = w2 * (1.0 / jnp.sqrt(hidden_dim))
    b2 = 0.01 * jax.random.normal(k4, (hidden_dim * 2,), jnp.float32)
    return {"w1": w1, "b1": b1, "w2": w2, "b2": b2}


def _pad_to(a, shape):
    pad = [(0, t - s) for s, t in zip(a.shape, shape)]
    return jnp.pad(a, pad)


def prepare_params(params):
    """One-time (per model) padding + stacking of conv weights & biases.

    Layout of the stacked f32 buffer (lane-padded to 128):
        rows [0, f_in)          : W1  (f_in, 128)
        rows [f_in, f_in+128)   : W2  (128, 128)
        row  f_in+128           : b1  (1, 128)
        row  f_in+129           : b2  (1, 128)
    """
    w1, b1, w2, b2 = params["w1"], params["b1"], params["w2"], params["b2"]
    f_in = w1.shape[0]
    w1p = _pad_to(w1, (f_in, _LANE))
    w2p = _pad_to(w2, (_LANE, _LANE))
    b1p = _pad_to(b1.reshape(1, -1), (1, _LANE))
    b2p = _pad_to(b2.reshape(1, -1), (1, _LANE))
    return jnp.concatenate([w1p, w2p, b1p, b2p], axis=0).astype(jnp.float32)


@functools.partial(jax.jit, static_argnames=("out_dim",))
def gnn_lep_forward(wb, x, edge_index, edge_weight, *, out_dim):
    """Batched forward.

    x: (B, N, F) f32; edge_index: (B, 2, I) int32 (row 0 = node idx, row 1 =
    hyperedge idx); edge_weight: (B, E) f32.  Graphs are padded to a common
    (N, E); zero-degree padding rows/columns are neutralized by the in-kernel
    degree guards.
    """
    B, N, _ = x.shape
    E = edge_weight.shape[-1]

    # Incidence H built with one-hot matmuls (MXU) instead of TPU scatters.
    # Duplicate (node, hyperedge) pairs accumulate to >1, matching PyG scatter_add.
    def _incidence(ei):
        return jnp.dot(jax.nn.one_hot(ei[0], N, dtype=jnp.float32).T,
                       jax.nn.one_hot(ei[1], E, dtype=jnp.float32))

    H = jax.vmap(_incidence)(edge_index)                      # (B, N, E)
    ew = edge_weight.reshape(B, 1, E).astype(jnp.float32)     # (B, 1, E)

    out = _fused_gnn_lep(x.astype(jnp.float32), H, ew, wb)    # (B, N, 128)
    return out[..., :out_dim]


# --------------------------------------------------------------------------- #
# Pure-JAX reference (unfused, unpadded, scatter-built H, f32 highest precision)
# --------------------------------------------------------------------------- #
def _reference_forward(params, x, edge_index, edge_weight, num_edges):
    hp = lax.Precision.HIGHEST
    N = x.shape[0]
    row, col = edge_index[0], edge_index[1]
    H = jnp.zeros((N, num_edges), jnp.float32).at[row, col].add(1.0)
    D = H @ edge_weight
    Bdeg = jnp.sum(H, axis=0)
    dinv = jnp.where(D > 0, 1.0 / D, 0.0)
    binv = jnp.where(Bdeg > 0, edge_weight / Bdeg, 0.0)
    L = jnp.dot(dinv[:, None] * H * binv[None, :], H.T, precision=hp)
    h = jnp.maximum(
        jnp.dot(L, jnp.dot(x, params["w1"], precision=hp), precision=hp)
        + params["b1"], 0.0)
    return jnp.maximum(
        jnp.dot(L, jnp.dot(h, params["w2"], precision=hp), precision=hp)
        + params["b2"], 0.0)


# --------------------------------------------------------------------------- #
# Test
# --------------------------------------------------------------------------- #
if __name__ == "__main__":
    num_features = 16
    hidden_dim = 32
    B = 4           # graphs per batch
    N = 64          # nodes per graph (padded)
    E = 32          # hyperedges per graph
    I = 160         # incidences per graph (nnz of H)

    key = jax.random.PRNGKey(0)
    kx, ki, kj, kw, kp = jax.random.split(key, 5)

    x = jax.random.normal(kx, (B, N, num_features), jnp.float32)
    rows = jax.random.randint(ki, (B, I), 0, N, jnp.int32)
    cols = jax.random.randint(kj, (B, I), 0, E, jnp.int32)
    edge_index = jnp.stack([rows, cols], axis=1)          # (B, 2, I)
    edge_weight = jax.random.uniform(kw, (B, E), jnp.float32, 0.5, 1.5)

    params = init_params(kp, num_features, hidden_dim)
    wb = prepare_params(params)                           # one-time param prep

    out = gnn_lep_forward(wb, x, edge_index, edge_weight,
                          out_dim=hidden_dim * 2)
    out = jax.block_until_ready(out)
    assert out.shape == (B, N, hidden_dim * 2), out.shape
    assert bool(jnp.all(jnp.isfinite(out)))

    # f32 throughout -> tight agreement with the f32 reference.
    ref = jax.vmap(
        lambda xb, eib, ewb: _reference_forward(params, xb, eib, ewb, E)
    )(x, edge_index, edge_weight)
    max_err = float(jnp.max(jnp.abs(out - ref)))
    assert max_err < 1e-2, f"max abs err {max_err}"

    print("KERNEL_OK")
</pallas_src>

<mosaic_0001>
module attributes {stable_mosaic.version = 11 : i64} {
  func.func @kernel(%arg0: i32, %arg1: memref<1x64x16xf32, #tpu.memory_space<vmem>>, %arg2: memref<1x64x32xf32, #tpu.memory_space<vmem>>, %arg3: memref<1x1x32xf32, #tpu.memory_space<vmem>>, %arg4: memref<146x128xf32, #tpu.memory_space<vmem>>, %arg5: memref<1x64x128xf32, #tpu.memory_space<vmem>>) attributes {dimension_semantics = [#tpu.dimension_semantics<parallel>], iteration_bounds = array<i64: 4>, scalar_prefetch = 0 : i64, scratch_operands = 0 : i64, tpu.core_type = #tpu.core_type<tc>, window_params = [{transform_indices = @transform_0, window_bounds = array<i64: 1, 64, 16>}, {transform_indices = @transform_1, window_bounds = array<i64: 1, 64, 32>}, {transform_indices = @transform_2, window_bounds = array<i64: 1, 1, 32>}, {pipeline_mode = #tpu.pipeline_mode<synchronous>, transform_indices = @transform_3, window_bounds = array<i64: 146, 128>}, {transform_indices = @transform_4, window_bounds = array<i64: 1, 64, 128>}]} {
    %c0 = arith.constant 0 : index
    %c0_0 = arith.constant 0 : index
    %c0_1 = arith.constant 0 : index
    %0 = vector.load %arg1[%c0, %c0_0, %c0_1] : memref<1x64x16xf32, #tpu.memory_space<vmem>>, vector<1x64x16xf32>
    %1 = vector.shape_cast %0 : vector<1x64x16xf32> to vector<64x16xf32>
    %c0_2 = arith.constant 0 : index
    %c0_3 = arith.constant 0 : index
    %c0_4 = arith.constant 0 : index
    %2 = vector.load %arg2[%c0_2, %c0_3, %c0_4] : memref<1x64x32xf32, #tpu.memory_space<vmem>>, vector<1x64x32xf32>
    %3 = vector.shape_cast %2 : vector<1x64x32xf32> to vector<64x32xf32>
    %c0_5 = arith.constant 0 : index
    %c0_6 = arith.constant 0 : index
    %c0_7 = arith.constant 0 : index
    %4 = vector.load %arg3[%c0_5, %c0_6, %c0_7] : memref<1x1x32xf32, #tpu.memory_space<vmem>>, vector<1x1x32xf32>
    %5 = vector.shape_cast %4 : vector<1x1x32xf32> to vector<1x32xf32>
    %c0_8 = arith.constant 0 : index
    %c0_9 = arith.constant 0 : index
    %6 = vector.load %arg4[%c0_8, %c0_9] : memref<146x128xf32, #tpu.memory_space<vmem>>, vector<16x128xf32>
    %c16 = arith.constant 16 : index
    %c0_10 = arith.constant 0 : index
    %7 = vector.load %arg4[%c16, %c0_10] : memref<146x128xf32, #tpu.memory_space<vmem>>, vector<128x128xf32>
    %c144 = arith.constant 144 : index
    %c0_11 = arith.constant 0 : index
    %8 = vector.load %arg4[%c144, %c0_11] : memref<146x128xf32, #tpu.memory_space<vmem>>, vector<1x128xf32>
    %c145 = arith.constant 145 : index
    %c0_12 = arith.constant 0 : index
    %9 = vector.load %arg4[%c145, %c0_12] : memref<146x128xf32, #tpu.memory_space<vmem>>, vector<1x128xf32>
    %10 = vector.broadcast %5 : vector<1x32xf32> to vector<64x32xf32>
    %11 = arith.mulf %3, %10 : vector<64x32xf32>
    %cst = arith.constant dense<0.000000e+00> : vector<64xf32>
    %12 = vector.multi_reduction <add>, %11, %cst [1] : vector<64x32xf32> to vector<64xf32>
    %13 = vector.shape_cast %12 : vector<64xf32> to vector<64x1xf32>
    %cst_13 = arith.constant dense<0.000000e+00> : vector<32xf32>
    %14 = vector.multi_reduction <add>, %3, %cst_13 [0] : vector<64x32xf32> to vector<32xf32>
    %15 = vector.shape_cast %14 : vector<32xf32> to vector<1x32xf32>
    %cst_14 = arith.constant 0.000000e+00 : f32
    %16 = vector.broadcast %cst_14 : f32 to vector<64x1xf32>
    %17 = arith.cmpf ogt, %13, %16 : vector<64x1xf32>
    %cst_15 = arith.constant 1.000000e+00 : f32
    %cst_16 = arith.constant 0.000000e+00 : f32
    %18 = vector.broadcast %cst_15 : f32 to vector<64x1xf32>
    %19 = vector.broadcast %cst_16 : f32 to vector<64x1xf32>
    %20 = arith.select %17, %18, %19 : vector<64x1xi1>, vector<64x1xf32>
    %cst_17 = arith.constant 0.000000e+00 : f32
    %21 = vector.broadcast %cst_17 : f32 to vector<64x1xf32>
    %22 = arith.cmpf ogt, %13, %21 : vector<64x1xf32>
    %cst_18 = arith.constant 1.000000e+00 : f32
    %23 = vector.broadcast %cst_18 : f32 to vector<64x1xf32>
    %24 = arith.select %22, %13, %23 : vector<64x1xi1>, vector<64x1xf32>
    %25 = arith.divf %20, %24 : vector<64x1xf32>
    %cst_19 = arith.constant 0.000000e+00 : f32
    %26 = vector.broadcast %cst_19 : f32 to vector<1x32xf32>
    %27 = arith.cmpf ogt, %15, %26 : vector<1x32xf32>
    %cst_20 = arith.constant 0.000000e+00 : f32
    %28 = vector.broadcast %cst_20 : f32 to vector<1x32xf32>
    %29 = arith.select %27, %5, %28 : vector<1x32xi1>, vector<1x32xf32>
    %cst_21 = arith.constant 0.000000e+00 : f32
    %30 = vector.broadcast %cst_21 : f32 to vector<1x32xf32>
    %31 = arith.cmpf ogt, %15, %30 : vector<1x32xf32>
    %cst_22 = arith.constant 1.000000e+00 : f32
    %32 = vector.broadcast %cst_22 : f32 to vector<1x32xf32>
    %33 = arith.select %31, %15, %32 : vector<1x32xi1>, vector<1x32xf32>
    %34 = arith.divf %29, %33 : vector<1x32xf32>
    %35 = vector.broadcast %25 : vector<64x1xf32> to vector<64x32xf32>
    %36 = arith.mulf %35, %3 : vector<64x32xf32>
    %37 = vector.broadcast %34 : vector<1x32xf32> to vector<64x32xf32>
    %38 = arith.mulf %36, %37 : vector<64x32xf32>
    %cst_23 = arith.constant dense<0.000000e+00> : vector<64x64xf32>
    %39 = tpu.matmul %38, %3, %cst_23 {dimension_numbers = #tpu.dot_dimension_numbers<[1], [1], [0], [0], [0, 0, 1, 0], [], []>} : vector<64x32xf32>, vector<64x32xf32>, vector<64x64xf32> -> vector<64x64xf32>
    %cst_24 = arith.constant dense<0.000000e+00> : vector<64x128xf32>
    %40 = tpu.matmul %1, %6, %cst_24 {dimension_numbers = #tpu.dot_dimension_numbers<[1], [0], [0], [1], [0, 0, 1, 1], [], []>} : vector<64x16xf32>, vector<16x128xf32>, vector<64x128xf32> -> vector<64x128xf32>
    %cst_25 = arith.constant dense<0.000000e+00> : vector<64x128xf32>
    %41 = tpu.matmul %39, %40, %cst_25 {dimension_numbers = #tpu.dot_dimension_numbers<[1], [0], [0], [1], [0, 0, 1, 1], [], []>} : vector<64x64xf32>, vector<64x128xf32>, vector<64x128xf32> -> vector<64x128xf32>
    %42 = vector.broadcast %8 : vector<1x128xf32> to vector<64x128xf32>
    %43 = arith.addf %41, %42 : vector<64x128xf32>
    %cst_26 = arith.constant 0.000000e+00 : f32
    %44 = vector.broadcast %cst_26 : f32 to vector<64x128xf32>
    %45 = arith.maximumf %43, %44 : vector<64x128xf32>
    %cst_27 = arith.constant dense<0.000000e+00> : vector<64x128xf32>
    %46 = tpu.matmul %45, %7, %cst_27 {dimension_numbers = #tpu.dot_dimension_numbers<[1], [0], [0], [1], [0, 0, 1, 1], [], []>} : vector<64x128xf32>, vector<128x128xf32>, vector<64x128xf32> -> vector<64x128xf32>
    %cst_28 = arith.constant dense<0.000000e+00> : vector<64x128xf32>
    %47 = tpu.matmul %39, %46, %cst_28 {dimension_numbers = #tpu.dot_dimension_numbers<[1], [0], [0], [1], [0, 0, 1, 1], [], []>} : vector<64x64xf32>, vector<64x128xf32>, vector<64x128xf32> -> vector<64x128xf32>
    %48 = vector.broadcast %9 : vector<1x128xf32> to vector<64x128xf32>
    %49 = arith.addf %47, %48 : vector<64x128xf32>
    %cst_29 = arith.constant 0.000000e+00 : f32
    %50 = vector.broadcast %cst_29 : f32 to vector<64x128xf32>
    %51 = arith.maximumf %49, %50 : vector<64x128xf32>
    %c0_30 = arith.constant 0 : index
    %c0_31 = arith.constant 0 : index
    %c0_32 = arith.constant 0 : index
    %52 = vector.load %arg5[%c0_30, %c0_31, %c0_32] : memref<1x64x128xf32, #tpu.memory_space<vmem>>, vector<1x64x128xf32>
    %53 = vector.shape_cast %52 : vector<1x64x128xf32> to vector<64x128xf32>
    %54 = vector.shape_cast %51 : vector<64x128xf32> to vector<1x64x128xf32>
    tpu.vector_store %arg5[%c0_30, %c0_31, %c0_32], %54 {strides = array<i32>} : memref<1x64x128xf32, #tpu.memory_space<vmem>>, vector<1x64x128xf32>,
    return
  }
  func.func @transform_0(%arg0: i32) -> (i32, i32, i32) {
    %c0_i32 = arith.constant 0 : i32
    %c0_i32_0 = arith.constant 0 : i32
    %c0_i32_1 = arith.constant 0 : i32
    return %arg0, %c0_i32, %c0_i32_0 : i32, i32, i32
  }
  func.func @transform_1(%arg0: i32) -> (i32, i32, i32) {
    %c0_i32 = arith.constant 0 : i32
    %c0_i32_0 = arith.constant 0 : i32
    %c0_i32_1 = arith.constant 0 : i32
    return %arg0, %c0_i32, %c0_i32_0 : i32, i32, i32
  }
  func.func @transform_2(%arg0: i32) -> (i32, i32, i32) {
    %c0_i32 = arith.constant 0 : i32
    %c0_i32_0 = arith.constant 0 : i32
    %c0_i32_1 = arith.constant 0 : i32
    return %arg0, %c0_i32, %c0_i32_0 : i32, i32, i32
  }
  func.func @transform_3(%arg0: i32) -> (i32, i32) {
    %c0_i32 = arith.constant 0 : i32
    %c0_i32_0 = arith.constant 0 : i32
    %c0_i32_1 = arith.constant 0 : i32
    return %c0_i32, %c0_i32_0 : i32, i32
  }
  func.func @transform_4(%arg0: i32) -> (i32, i32, i32) {
    %c0_i32 = arith.constant 0 : i32
    %c0_i32_0 = arith.constant 0 : i32
    %c0_i32_1 = arith.constant 0 : i32
    return %arg0, %c0_i32, %c0_i32_0 : i32, i32, i32
  }
}

</mosaic_0001>

<bundles_post_ra>
// kernel: gnn_lep_forward.1
= control target key start
LH: loop header
LB: loop body
LE: loop exit
PB: predicated region body
PF: predicated region fallthrough
CT: control target
= control target key end

     0   :  { %9 = vsyncpa [#allocation3], 0  ;;  %s1642_s0 = inlined_call_operand.vmem [shape: f32[4,64,16], index: 0, kind: input, shape index: {}]   ;;  %s1643_s1 = inlined_call_operand.vmem [shape: f32[4,64,32], index: 1, kind: input, shape index: {}]   ;;  %s1644_s2 = inlined_call_operand.vmem [shape: f32[4,1,32], index: 2, kind: input, shape index: {}]   ;;  %s1645_s3 = inlined_call_operand.vmem [shape: f32[146,128], index: 3, kind: input, shape index: {}]   ;;  %s1646_s4 = inlined_call_operand.hbm [shape: f32[4,64,128], index: 4, kind: output, shape index: {}]  }
   0x1   :  { %11 = vsyncpa [#allocation3 + $0x1], 0  ;;  %s1145_s15 = smov 0   ;;  %s1147_s16 = smov 0  }
   0x2   :  { %s1149_s17 = smov 0   ;;  %s1151_s18 = smov 0  }
   0x3 LB: > { %s1166_s19 = sadd.s32 4294967295, %s1115_s18   ;;  %s931_s20 = sadd.s32 4294967294, %s1115_s18   ;;  %s1115_s18 = sphi %s1151_s18, %s1662_s18   ;;  %s1111_s17 = sphi %s1149_s17, %s1661_s17   ;;  %s1107_s16 = sphi %s1147_s16, %s1660_s16   ;;  %s1103_s15 = sphi %s1145_s15, %s1659_s15  }
   0x4   : > { %s1170_s21 = sadd.s32 1, %s1115_s18   ;;  %s123_s22 = sadd.s32 1, %s1111_s17 }
   0x5   : > { %s120_s23 = ssub.s32 %s1115_s18, %s1170_s21  ;;  %p133_p0 = scmp.ne.s32.totalorder %s1111_s17, %s1107_s16 }
   0x6   : > { %p121_p1 = scmp.eq.s32.totalorder %s120_s23, 0  ;;  %p134_p2 = scmp.eq.s32.totalorder %s1166_s19, 3 }
   0x7   : > { %p139_p3 = scmp.ne.s32.totalorder %s1107_s16, %s1103_s15  ;;  %p140_p4 = scmp.eq.s32.totalorder %s931_s20, 3 }
   0x8   : > { %s1181_s24 = scalar_select %p121_p1, %s1111_s17, %s123_s22  }
   0x9   : > { %p1183_p5 = por %p134_p2, %p133_p0  ;;  %p1187_p6 = por %p140_p4, %p139_p3 }
   0xa   : > { %p934_p7 = scmp.ge.s32.totalorder %s1115_s18, 1  ;;  %p183_p8 = scmp.lt.s32.totalorder %s1115_s18, 5 }
   0xc   : > { %p184_p9 = pnand %p934_p7, %p183_p8 }
   0xd   : > { %p217_p10 = scmp.lt.s32.totalorder (!%p184_p9), %s1166_s19, 3  ;;  %s214_s22 = sand.u32 (!%p184_p9), 1, %s1107_s16  }
   0xe   : > { %187 = sbr.rel (%p184_p9) target bundleno = 824 (0x338), region = 36  ;;  %s987_s30 = sshll.u32 (!%p184_p9), %s1166_s19, 6 }
   0xf   : > { %s844_s7 = scalar_lea.hbm (!%p184_p9), %s1646_s4, %s987_s30  ;;  %s833_s10 = scalar_lea.sflag (!%p184_p9), [#allocation3], %s214_s22 }
  0x10   : > { %s847_s9 = sshll.u32 (!%p184_p9), %s844_s7, 4  ;;  %s1073_s14 = scalar_lea.hbm (!%p184_p9), %s1646_s4, 256  ;;  %s848_s9 = int_to_ptr.hbm [resolvable:$true] %s847_s9 }
  0x13   : > { %s1195_s27 = scalar_select %p217_p10, %s1166_s19, 3  ;;  %vm278_vm0 = vcmask 261120   ;;  %v248_v25 = vld [vmem:[%s1645_s3 + $0x8] sm:$0xff]  ;;  %v247_v26 = vld [vmem:[%s1645_s3] sm:$0xff]  ;;  %vm592_vm1 = vcmask 130048  }
  0x14   : > { %988 = vmatpush.msra.mxu2 %v248_v25  ;;  %631 = vmatpush.msra.mxu1 %v248_v25 }
  0x15   : > { %s985_s28 = sshll.u32 %s1195_s27, 6  ;;  %s1202_s5 = scalar_lea.vmem %s1644_s2, %s1195_s27 }
  0x16   : > { %s226_s8 = scalar_lea.vmem %s1643_s1, %s985_s28  ;;  %v1032_v0 = vld [vmem:[%s1202_s5] ss:$0 sm:$0xff]  ;;  %s1253_s11 = scalar_lea.vmem %s1642_s0, %s985_s28  ;;  %989 = vmatpush.msra.mxu2 %v247_v26  ;;  %632 = vmatpush.msra.mxu1 %v247_v26 }
  0x17   : > { %v1210_v1 = vld [vmem:[%s226_s8 + $0x10] sm:$0xff]  ;;  %v1212_v2 = vld [vmem:[%s226_s8] sm:$0xff]  ;;  %v1218_v6 = vld [vmem:[%s226_s8 + $0x18] sm:$0xff]  ;;  %s935_s28 = sshll.u32 %s214_s22, 6 }
  0x18   : > { %v272_v3 = vmul.f32 %v1032_v0, %v1210_v1  ;;  %v270_v4 = vmul.f32 %v1032_v0, %v1212_v2  ;;  %v1216_v5 = vld [vmem:[%s226_s8 + $0x20] sm:$0xff]  ;;  %v1220_v7 = vld [vmem:[%s226_s8 + $0x8] sm:$0xff]  ;;  %v1222_v8 = vld [vmem:[%s226_s8 + $0x38] sm:$0xff]  ;;  %v273_v13 = vmul.f32 %v1032_v0, %v1218_v6  ;;  %v303_v33 = vsel %vm278_vm0, %v1212_v2, 0.0  ;;  %s1598_s29 = scalar_lea.vmem [#allocation2], %s935_s28 }
  0x19   : > { %v274_v11 = vmul.f32 %v1032_v0, %v1216_v5  ;;  %940 = vmatpush.xpose.msk.msra.mxu0 %vm278_vm0, %v1222_v8  ;;  %v1229_v12 = vld [vmem:[%s226_s8 + $0x28] sm:$0xff]  ;;  %v271_v14 = vmul.f32 %v1032_v0, %v1220_v7  ;;  %v1234_v16 = vld [vmem:[%s226_s8 + $0x30] sm:$0xff]  ;;  %v277_v22 = vmul.f32 %v1032_v0, %v1222_v8  ;;  %v234_v27 = vld [vmem:[%s1253_s11 + $0x20] sm:$0xff]  ;;  %v304_v34 = vsel %vm278_vm0, %v1220_v7, 0.0  ;;  %s845_s8 = sshll.u32 %s1598_s29, 4  ;;  %s846_s8 = int_to_ptr.vmem [resolvable:$true] %s845_s8 }
  0x1a   : > { %v285_v9 = vsel %vm278_vm0, %v272_v3, 0.0  ;;  %v279_v10 = vsel %vm278_vm0, %v270_v4, 0.0  ;;  %v275_v17 = vmul.f32 %v1032_v0, %v1229_v12  ;;  %v288_v18 = vsel %vm278_vm0, %v273_v13, 0.0  ;;  %v230_v28 = vld [vmem:[%s1253_s11] sm:$0xff]  ;;  %960 = vmatmul.msk.f32.vlgmr.msra.gmra.mxu2 %vm592_vm1, %v234_v27  ;;  %v235_v29 = vld [vmem:[%s1253_s11 + $0x28] sm:$0xff]  ;;  %v236_v31 = vld [vmem:[%s1253_s11 + $0x30] sm:$0xff] }
  0x1b   : > { %286 = vadd.xlane.f32.xlu1 %v285_v9  ;;  %280 = vadd.xlane.f32.xlu0 %v279_v10  ;;  %v291_v15 = vsel %vm278_vm0, %v274_v11, 0.0  ;;  %v282_v19 = vsel %vm278_vm0, %v271_v14, 0.0  ;;  %v276_v21 = vmul.f32 %v1032_v0, %v1234_v16  ;;  %v300_v24 = vsel %vm278_vm0, %v277_v22, 0.0  ;;  %v231_v30 = vld [vmem:[%s1253_s11 + $0x8] sm:$0xff]  ;;  %v232_v32 = vld [vmem:[%s1253_s11 + $0x10] sm:$0xff]  ;;  %v237_v35 = vld [vmem:[%s1253_s11 + $0x38] sm:$0xff] }
  0x1c   : > { %292 = vadd.xlane.f32.xlu2 %v291_v15  ;;  %v294_v20 = vsel %vm278_vm0, %v275_v17, 0.0  ;;  %956 = vmatmul.msk.f32.vlgmr.msra.gmra.mxu1 %vm592_vm1, %v230_v28  ;;  %v233_v36 = vld [vmem:[%s1253_s11 + $0x18] sm:$0xff]  ;;  %v305_v37 = vadd.f32 %v304_v34, %v303_v33  ;;  %v306_v38 = vsel %vm278_vm0, %v1210_v1, 0.0  ;;  %v308_v40 = vsel %vm278_vm0, %v1218_v6, 0.0  ;;  %v246_v17 = vld [vmem:[%s1202_s5] sm:$0x1] }
  0x1d   : > { %941 = vmatpush.xpose.msk.msra.mxu0 %vm278_vm0, %v1234_v16  ;;  %v297_v23 = vsel %vm278_vm0, %v276_v21, 0.0  ;;  %v310_v42 = vsel %vm278_vm0, %v1216_v5, 0.0  ;;  %v312_v44 = vsel %vm278_vm0, %v1229_v12, 0.0  ;;  %v314_v46 = vsel %vm278_vm0, %v1234_v16, 0.0  ;;  %s1067_s11 = sshra.s32 %s848_s9, 4  ;;  %s1068_s11 = int_to_ptr.hbm [resolvable:$true] %s1067_s11 }
  0x1e   : > { %v307_v39 = vadd.f32 %v306_v38, %v305_v37  ;;  %v316_v48 = vsel %vm278_vm0, %v1222_v8, 0.0  ;;  %s1069_s19 = scalar_lea.hbm %s1068_s11, 64  ;;  %p1074_p0 = scmp.lt.s32.totalorder %s1068_s11, %s1646_s4 }
  0x1f   : > { %p1070_p11 = scmp.ne.s32.totalorder %s1068_s11, %s1069_s19  ;;  %p1075_p1 = scmp.lt.s32.totalorder %s1073_s14, %s1069_s19 }
  0x20   : > { %v309_v41 = vadd.f32 %v308_v40, %v307_v39 }
  0x21   : > { %942 = vmatpush.xpose.msk.msra.mxu0 %vm278_vm0, %v1229_v12  ;;  %p1071_p12 = pnand %p1070_p11, %p1183_p5  ;;  %p1076_p2 = por %p1075_p1, %p1074_p0 }
  0x22   : > { %961 = vmatmul.msk.f32.gmra.mxu2 %vm592_vm1, %v235_v29  ;;  %v311_v43 = vadd.f32 %v310_v42, %v309_v41  ;;  %v1117_v42 = vmov 0.0  }
  0x23   : > { %289 = vadd.xlane.f32.xlu1 %v288_v18  ;;  %283 = vadd.xlane.f32.xlu0 %v282_v19  ;;  %p1072_p13 = pneg %p1071_p12 }
  0x24   : > { %295 = vadd.xlane.f32.xlu2 %v294_v20  ;;  %957 = vmatmul.msk.f32.gmra.mxu1 %vm592_vm1, %v231_v30  ;;  %v313_v45 = vadd.f32 %v312_v44, %v311_v43 }
  0x25   : > { %943 = vmatpush.xpose.msk.msra.mxu0 %vm278_vm0, %v1216_v5  ;;  %p1077_p3 = pnand %p1076_p2, %p1072_p13 }
  0x26   : > { %v315_v47 = vadd.f32 %v314_v46, %v313_v45 }
  0x28   : > { %v317_v49 = vadd.f32 %v316_v48, %v315_v47 }
  0x29   : > { %944 = vmatpush.xpose.msk.msra.mxu0 %vm278_vm0, %v1218_v6 }
  0x2a   : > { %962 = vmatmul.msk.f32.gmra.mxu2 %vm592_vm1, %v236_v31  ;;  %v318_v50 = vrot.slane %v317_v49, 4 }
  0x2b   : > { %298 = vadd.xlane.f32.xlu0 %v297_v23  ;;  %301 = vadd.xlane.f32.xlu1 %v300_v24 }
  0x2c   : > { %958 = vmatmul.msk.f32.gmra.mxu1 %vm592_vm1, %v232_v32  ;;  %v319_v51 = vadd.f32 %v318_v50, %v317_v49 }
  0x2d   : > { %945 = vmatpush.xpose.msk.msra.mxu0 %vm278_vm0, %v1210_v1 }
  0x2e   : > { %v320_v52 = vrot.slane %v319_v51, 2 }
  0x30   : > { %v321_v53 = vadd.f32 %v320_v52, %v319_v51 }
  0x31   : > { %946 = vmatpush.xpose.msk.msra.mxu0 %vm278_vm0, %v1220_v7 }
  0x32   : > { %963 = vmatmul.msk.f32.gmra.mxu2 %vm592_vm1, %v237_v35  ;;  %v322_v54 = vrot.slane %v321_v53, 1 }
  0x34   : > { %959 = vmatmul.msk.f32.gmra.mxu1 %vm592_vm1, %v233_v36  ;;  %v323_v55 = vadd.f32 %v322_v54, %v321_v53 }
  0x35   : > { %947 = vmatpush.xpose.msk.msra.mxu0 %vm278_vm0, %v1212_v2 }
  0x36   : > { %vm468_vm2 = vcmp.gt.f32.partialorder %v323_v55, 0.0 }
  0x37   : > { %v470_v56 = vsel %vm468_vm2, %v323_v55, 1.0  ;;  %v469_v23 = vsel %vm468_vm2, %v246_v17, 0.0 }
  0x38   : > { %1035 = vrcp.f32 %v470_v56  ;;  %vm476_vm5 = vweird.f32 %v470_v56  ;;  %v482_v3 = vand.u32 2147483648, %v470_v56  ;;  %v480_v9 = vand.u32 2147483647, %v470_v56 }
  0x3a   : > { %v483_v18 = vor.u32 1.1754944e-38, %v482_v3  ;;  %vm481_vm9 = vcmp.eq.f32.partialorder %v480_v9, 8.507059e+37 }
  0x3e   : > { %v1036_v57 = vpop.eup %1035 }
  0x3f   : > { %v472_v58 = vmul.f32 %v1036_v57, %v470_v56  ;;  %vm477_vm6 = vweird.f32 %v1036_v57 }
  0x40   : > { %vm1314_vm7 = vmor %vm476_vm5, %vm477_vm6 }
  0x41   : > { %v473_v59 = vsub.f32 1.0, %v472_v58 }
  0x43   : > { %v474_v62 = vmul.f32 %v1036_v57, %v473_v59 }
  0x45   : > { %v475_v4 = vadd.f32 %v1036_v57, %v474_v62 }
  0x47   : > { %v479_v20 = vsel %vm1314_vm7, %v1036_v57, %v475_v4 }
  0x48   : > { %v484_v25 = vsel %vm481_vm9, %v483_v18, %v479_v20 }
  0x49   : > { %v485_v31 = vmul.f32 %v484_v25, %v469_v23 }
  0x4b   : > { %v1354_v40 = vperm.slane %v485_v31, 0 }
  0x8e   : > { %v1304_v60 = vpop.xlane.xlu1 %286  ;;  %v281_v61 = vpop.xlane.xlu0 %280 }
  0x8f   : > { %vm326_vm3 = vcmp.gt.f32.partialorder %v1304_v60, 0.0  ;;  %vm324_vm4 = vcmp.gt.f32.partialorder %v281_v61, 0.0  ;;  %v1318_v11 = vpop.xlane.xlu2 %292 }
  0x90   : > { %v1310_v63 = vsel %vm326_vm3, %v1304_v60, 1.0  ;;  %v340_v0 = vsel %vm324_vm4, %v281_v61, 1.0  ;;  %vm328_vm11 = vcmp.gt.f32.partialorder %v1318_v11, 0.0  ;;  %v332_v43 = vsel %vm324_vm4, 1.0, %v1117_v42 }
  0x91   : > { %1037 = vrcp.f32 %v1310_v63  ;;  %v359_v28 = vand.u32 2147483648, %v340_v0  ;;  %v357_v30 = vand.u32 2147483647, %v340_v0  ;;  %v1347_v33 = vsel %vm328_vm11, %v1318_v11, 1.0 }
  0x92   : > { %1039 = vrcp.f32 %v340_v0  ;;  %vm353_vm13 = vweird.f32 %v340_v0  ;;  %vm383_vm2 = vweird.f32 %v1310_v63  ;;  %v387_v48 = vand.u32 2147483647, %v1310_v63 }
  0x93   : > { %v360_v36 = vor.u32 1.1754944e-38, %v359_v28  ;;  %vm358_vm15 = vcmp.eq.f32.partialorder %v357_v30, 8.507059e+37  ;;  %v389_v49 = vand.u32 2147483648, %v1310_v63 }
  0x94   : > { %vm1382_vm7 = vcmp.eq.f32.partialorder %v387_v48, 8.507059e+37 }
  0x95   : > { %v390_v3 = vor.u32 1.1754944e-38, %v389_v49 }
  0x96   : > { %v1320_v13 = vpop.xlane.xlu1 %289  ;;  %v1322_v14 = vpop.xlane.xlu0 %283 }
  0x97   : > { %v1324_v15 = vpop.eup %1037  ;;  %vm327_vm8 = vcmp.gt.f32.partialorder %v1320_v13, 0.0  ;;  %vm325_vm10 = vcmp.gt.f32.partialorder %v1322_v14, 0.0  ;;  %v1351_v37 = vpop.xlane.xlu2 %295 }
  0x98   : > { %v1040_v19 = vpop.eup %1039  ;;  %v1333_v21 = vsel %vm327_vm8, %v1320_v13, 1.0  ;;  %v379_v24 = vmul.f32 %v1324_v15, %v1310_v63  ;;  %v341_v27 = vsel %vm325_vm10, %v1322_v14, 1.0  ;;  %vm329_vm1 = vcmp.gt.f32.partialorder %v1351_v37, 0.0 }
  0x99   : > { %v349_v22 = vmul.f32 %v1040_v19, %v340_v0  ;;  %1041 = vrcp.f32 %v1333_v21  ;;  %vm354_vm12 = vweird.f32 %v1040_v19  ;;  %vm384_vm5 = vweird.f32 %v1324_v15 }
  0x9a   : > { %1043 = vrcp.f32 %v341_v27  ;;  %v380_v32 = vsub.f32 1.0, %v379_v24  ;;  %vm355_vm14 = vmor %vm353_vm13, %vm354_vm12  ;;  %v372_v53 = vand.u32 2147483647, %v341_v27  ;;  %v374_v54 = vand.u32 2147483648, %v341_v27 }
  0x9b   : > { %v350_v26 = vsub.f32 1.0, %v349_v22  ;;  %1045 = vrcp.f32 %v1347_v33  ;;  %v1371_v55 = vsel %vm329_vm1, %v1351_v37, 1.0  ;;  %vm1378_vm6 = vmor %vm383_vm2, %vm384_vm5  ;;  %vm368_vm9 = vweird.f32 %v341_v27 }
  0x9c   : > { %v381_v41 = vmul.f32 %v1324_v15, %v380_v32  ;;  %v375_v4 = vor.u32 1.1754944e-38, %v374_v54  ;;  %1047 = vrcp.f32 %v1371_v55  ;;  %vm373_vm13 = vcmp.eq.f32.partialorder %v372_v53, 8.507059e+37 }
  0x9d   : > { %v351_v29 = vmul.f32 %v1040_v19, %v350_v26  ;;  %v333_v18 = vsel %vm325_vm10, 1.0, %v1117_v42  ;;  %v402_v23 = vand.u32 2147483647, %v1333_v21  ;;  %v404_v14 = vand.u32 2147483648, %v1333_v21 }
  0x9e   : > { %v382_v52 = vadd.f32 %v1324_v15, %v381_v41  ;;  %v1387_v0 = vpop.xlane.xlu0 %298  ;;  %v1421_v31 = vpop.xlane.xlu1 %301  ;;  %v434_v53 = vand.u32 2147483648, %v1371_v55 }
  0x9f   : > { %v352_v34 = vadd.f32 %v1040_v19, %v351_v29  ;;  %v1349_v35 = vpop.eup %1041  ;;  %vm331_vm5 = vcmp.gt.f32.partialorder %v1421_v31, 0.0 }
  0xa0   : > { %v1044_v39 = vpop.eup %1043  ;;  %v394_v46 = vmul.f32 %v1349_v35, %v1333_v21  ;;  %v386_v9 = vsel %vm1378_vm6, %v1324_v15, %v382_v52  ;;  %vm399_vm2 = vweird.f32 %v1349_v35  ;;  %v334_v15 = vsel %vm326_vm3, 1.0, %v1117_v42 }
  0xa1   : > { %v356_v38 = vsel %vm355_vm14, %v1040_v19, %v352_v34  ;;  %v364_v47 = vmul.f32 %v1044_v39, %v341_v27  ;;  %v1373_v56 = vpop.eup %1045  ;;  %vm369_vm4 = vweird.f32 %v1044_v39  ;;  %vm330_vm14 = vcmp.gt.f32.partialorder %v1387_v0, 0.0 }
  0xa2   : > { %v361_v44 = vsel %vm358_vm15, %v360_v36, %v356_v38  ;;  %v395_v57 = vsub.f32 1.0, %v394_v46  ;;  %vm370_vm12 = vmor %vm368_vm9, %vm369_vm4  ;;  %v409_v63 = vmul.f32 %v1373_v56, %v1347_v33  ;;  %vm398_vm15 = vweird.f32 %v1333_v21  ;;  %v1048_v28 = vpop.eup %1047 }
  0xa3   : > { %v362_v45 = vmul.f32 %v361_v44, %v332_v43  ;;  %v365_v51 = vsub.f32 1.0, %v364_v47  ;;  %v391_v22 = vsel %vm1382_vm7, %v390_v3, %v386_v9  ;;  %v1414_v27 = vsel %vm330_vm14, %v1387_v0, 1.0  ;;  %vm1416_vm10 = vmor %vm398_vm15, %vm399_vm2 }
  0xa4   : > { %v396_v10 = vmul.f32 %v1349_v35, %v395_v57  ;;  %v410_v26 = vsub.f32 1.0, %v409_v63  ;;  %v392_v29 = vmul.f32 %v391_v22, %v334_v15  ;;  %v405_v21 = vor.u32 1.1754944e-38, %v404_v14 }
  0xa5   : > { %v486_v50 = vmul.f32 %v362_v45, %v1212_v2  ;;  %v366_v58 = vmul.f32 %v1044_v39, %v365_v51  ;;  %1049 = vrcp.f32 %v1414_v27  ;;  %vm403_vm3 = vcmp.eq.f32.partialorder %v402_v23, 8.507059e+37 }
  0xa6   : > { %v397_v24 = vadd.f32 %v1349_v35, %v396_v10  ;;  %v411_v32 = vmul.f32 %v1373_v56, %v410_v26  ;;  %v424_v34 = vmul.f32 %v1048_v28, %v1371_v55  ;;  %v488_v36 = vmul.f32 %v392_v29, %v1210_v1 }
  0xa7   : > { %v495_v59 = vmul.f32 %v1354_v40, %v486_v50  ;;  %v367_v62 = vadd.f32 %v1044_v39, %v366_v58  ;;  %vm413_vm4 = vweird.f32 %v1347_v33  ;;  %vm414_vm6 = vweird.f32 %v1373_v56 }
  0xa8   : > { %v335_v38 = vsel %vm327_vm8, 1.0, %v1117_v42  ;;  %v412_v41 = vadd.f32 %v1373_v56, %v411_v32  ;;  %v417_v43 = vand.u32 2147483647, %v1347_v33  ;;  %v425_v44 = vsub.f32 1.0, %v424_v34  ;;  %vm415_vm7 = vmor %vm413_vm4, %vm414_vm6 }
  0xa9   : > { %948 = vmatmul.msk.f32.vlgmr.msra.gmra.mxu0 %vm278_vm0, %v495_v59  ;;  %v371_v17 = vsel %vm370_vm12, %v1044_v39, %v367_v62  ;;  %v419_v39 = vand.u32 2147483648, %v1347_v33  ;;  %v1443_v1 = vsel %vm331_vm5, %v1421_v31, 1.0  ;;  %v497_v47 = vmul.f32 %v1354_v40, %v488_v36 }
  0xaa   : > { %v376_v19 = vsel %vm373_vm13, %v375_v4, %v371_v17  ;;  %1051 = vrcp.f32 %v1443_v1  ;;  %v416_v48 = vsel %vm415_vm7, %v1373_v56, %v412_v41  ;;  %vm418_vm8 = vcmp.eq.f32.partialorder %v417_v43, 8.507059e+37  ;;  %v634_v4 = vpop.f32.mrf.mxu1 }
  0xab   : > { %v377_v20 = vmul.f32 %v376_v19, %v333_v18  ;;  %v1050_v45 = vpop.eup %1049  ;;  %v420_v13 = vor.u32 1.1754944e-38, %v419_v39  ;;  %v426_v49 = vmul.f32 %v1048_v28, %v425_v44  ;;  %vm428_vm9 = vweird.f32 %v1371_v55 }
  0xac   : > { %v439_v33 = vmul.f32 %v1050_v45, %v1414_v27  ;;  %vm429_vm12 = vweird.f32 %v1048_v28  ;;  %v336_v51 = vsel %vm328_vm11, 1.0, %v1117_v42  ;;  %v432_v56 = vand.u32 2147483647, %v1371_v55  ;;  %v646_v55 = vpop.f32.mrf.mxu2 }
  0xad   : > { %v487_v25 = vmul.f32 %v377_v20, %v1220_v7  ;;  %v401_v7 = vsel %vm1416_vm10, %v1349_v35, %v397_v24  ;;  %v421_v52 = vsel %vm418_vm8, %v420_v13, %v416_v48  ;;  %v427_v54 = vadd.f32 %v1048_v28, %v426_v49  ;;  %vm1457_vm13 = vmor %vm428_vm9, %vm429_vm12  ;;  %v260_v13 = vld [vmem:[%s1645_s3 + $0x68] sm:$0xff]  ;;  %v259_v49 = vld [vmem:[%s1645_s3 + $0x60] sm:$0xff] }
  0xae   : > { %v406_v35 = vsel %vm403_vm3, %v405_v21, %v401_v7  ;;  %v440_v57 = vsub.f32 1.0, %v439_v33  ;;  %v435_v61 = vor.u32 1.1754944e-38, %v434_v53  ;;  %vm433_vm11 = vcmp.eq.f32.partialorder %v432_v56, 8.507059e+37  ;;  %v258_v33 = vld [vmem:[%s1645_s3 + $0x58] sm:$0xff]  ;;  %v255_v53 = vld [vmem:[%s1645_s3 + $0x40] sm:$0xff]  ;;  %v253_v56 = vld [vmem:[%s1645_s3 + $0x30] sm:$0xff] }
  0xaf   : > { %v496_v30 = vmul.f32 %v1354_v40, %v487_v25  ;;  %v407_v46 = vmul.f32 %v406_v35, %v335_v38  ;;  %v431_v11 = vsel %vm1457_vm13, %v1048_v28, %v427_v54  ;;  %vm443_vm15 = vweird.f32 %v1414_v27  ;;  %v254_v54 = vld [vmem:[%s1645_s3 + $0x38] sm:$0xff] }
  0xb0   : > { %v1052_v58 = vpop.eup %1051  ;;  %v441_v62 = vmul.f32 %v1050_v45, %v440_v57  ;;  %vm444_vm2 = vweird.f32 %v1050_v45  ;;  %v337_v9 = vsel %vm329_vm1, 1.0, %v1117_v42  ;;  %v436_v10 = vsel %vm433_vm11, %v435_v61, %v431_v11  ;;  %v252_v57 = vld [vmem:[%s1645_s3 + $0x28] sm:$0xff]  ;;  %v249_v61 = vld [vmem:[%s1645_s3 + $0x10] sm:$0xff] }
  0xb1   : > { %949 = vmatmul.msk.f32.gmra.mxu0 %vm278_vm0, %v496_v30  ;;  %v489_v50 = vmul.f32 %v407_v46, %v1218_v6  ;;  %v422_v6 = vmul.f32 %v421_v52, %v336_v51  ;;  %v454_v3 = vmul.f32 %v1052_v58, %v1443_v1  ;;  %v449_v17 = vand.u32 2147483648, %v1414_v27  ;;  %vm445_vm10 = vmor %vm443_vm15, %vm444_vm2  ;;  %v262_v46 = vld [vmem:[%s1645_s3 + $0x78] sm:$0xff]  ;;  %v256_v51 = vld [vmem:[%s1645_s3 + $0x48] sm:$0xff] }
  0xb2   : > { %v442_v18 = vadd.f32 %v1050_v45, %v441_v62  ;;  %v447_v19 = vand.u32 2147483647, %v1414_v27  ;;  %v437_v15 = vmul.f32 %v436_v10, %v337_v9  ;;  %vm458_vm1 = vweird.f32 %v1443_v1  ;;  %v637_v25 = vpop.f32.mrf.mxu1  ;;  %v1033_v11 = vld [vmem:[%s1645_s3 + $0x90] ss:$0 sm:$0xff] }
  0xb3   : > { %v498_v2 = vmul.f32 %v1354_v40, %v489_v50  ;;  %v490_v63 = vmul.f32 %v422_v6, %v1216_v5  ;;  %v455_v20 = vsub.f32 1.0, %v454_v3  ;;  %v450_v23 = vor.u32 1.1754944e-38, %v449_v17  ;;  %v257_v50 = vld [vmem:[%s1645_s3 + $0x50] sm:$0xff]  ;;  %v251_v6 = vld [vmem:[%s1645_s3 + $0x20] sm:$0xff] }
  0xb4   : > { %v446_v5 = vsel %vm445_vm10, %v1050_v45, %v442_v18  ;;  %vm448_vm3 = vcmp.eq.f32.partialorder %v447_v19, 8.507059e+37  ;;  %v649_v24 = vpop.f32.mrf.mxu2  ;;  %v491_v37 = vmul.f32 %v437_v15, %v1229_v12  ;;  %vm459_vm4 = vweird.f32 %v1052_v58  ;;  %v263_v45 = vld [vmem:[%s1645_s3 + $0x80] sm:$0xff] }
  0xb5   : > { %v499_v22 = vmul.f32 %v1354_v40, %v490_v63  ;;  %v456_v14 = vmul.f32 %v1052_v58, %v455_v20  ;;  %v338_v26 = vsel %vm330_vm14, 1.0, %v1117_v42  ;;  %v451_v27 = vsel %vm448_vm3, %v450_v23, %v446_v5  ;;  %vm460_vm6 = vmor %vm458_vm1, %vm459_vm4 }
  0xb6   : > { %v464_v28 = vand.u32 2147483648, %v1443_v1  ;;  %v462_v29 = vand.u32 2147483647, %v1443_v1  ;;  %v452_v30 = vmul.f32 %v451_v27, %v338_v26  ;;  %v500_v21 = vmul.f32 %v1354_v40, %v491_v37  ;;  %v264_v1 = vld [vmem:[%s1645_s3 + $0x88] sm:$0xff] }
  0xb7   : > { %v457_v60 = vadd.f32 %v1052_v58, %v456_v14  ;;  %v339_v0 = vsel %vm331_vm5, 1.0, %v1117_v42  ;;  %vm659_vm14 = vcmask 523264   ;;  %733 = vmatpush.msra.mxu3 %v264_v1 }
  0xb8   : > { %v465_v7 = vor.u32 1.1754944e-38, %v464_v28  ;;  %vm463_vm7 = vcmp.eq.f32.partialorder %v462_v29, 8.507059e+37  ;;  %v492_v34 = vmul.f32 %v452_v30, %v1234_v16 }
  0xb9   : > { %950 = vmatmul.msk.f32.gmra.mxu0 %vm278_vm0, %v497_v47  ;;  %v461_v12 = vsel %vm460_vm6, %v1052_v58, %v457_v60  ;;  %734 = vmatpush.msra.mxu3 %v263_v45  ;;  %v261_v47 = vld [vmem:[%s1645_s3 + $0x70] sm:$0xff] }
  0xba   : > { %v466_v36 = vsel %vm463_vm7, %v465_v7, %v461_v12  ;;  %v640_v38 = vpop.f32.mrf.mxu1  ;;  %v501_v39 = vmul.f32 %v1354_v40, %v492_v34 }
  0xbb   : > { %v467_v35 = vmul.f32 %v466_v36, %v339_v0  ;;  %735 = vmatpush.msra.mxu3 %v262_v46 }
  0xbc   : > { %v652_v32 = vpop.f32.mrf.mxu2 }
  0xbd   : > { %v493_v43 = vmul.f32 %v467_v35, %v1222_v8  ;;  %736 = vmatpush.msra.mxu3 %v261_v47 }
  0xbf   : > { %v502_v44 = vmul.f32 %v1354_v40, %v493_v43  ;;  %737 = vmatpush.msra.mxu3 %v260_v13 }
  0xc1   : > { %951 = vmatmul.msk.f32.gmra.mxu0 %vm278_vm0, %v498_v2  ;;  %738 = vmatpush.msra.mxu3 %v259_v49  ;;  %v250_v2 = vld [vmem:[%s1645_s3 + $0x18] sm:$0xff] }
  0xc2   : > { %v643_v16 = vpop.f32.mrf.mxu1 }
  0xc3   : > { %739 = vmatpush.msra.mxu3 %v258_v33 }
  0xc4   : > { %v655_v41 = vpop.f32.mrf.mxu2 }
  0xc5   : > { %692 = vmatpush.msrb.mxu2 %v655_v41  ;;  %740 = vmatpush.msra.mxu3 %v257_v50 }
  0xc7   : > { %693 = vmatpush.msrb.mxu2 %v652_v32  ;;  %741 = vmatpush.msra.mxu3 %v256_v51 }
  0xc9   : > { %952 = vmatmul.msk.f32.gmra.mxu0 %vm278_vm0, %v499_v22  ;;  %694 = vmatpush.msrb.mxu2 %v649_v24 }
  0xca   : > { %742 = vmatpush.msra.mxu3 %v255_v53 }
  0xcb   : > { %695 = vmatpush.msrb.mxu2 %v646_v55 }
  0xcc   : > { %743 = vmatpush.msra.mxu3 %v254_v54 }
  0xcd   : > { %696 = vmatpush.msrb.mxu2 %v643_v16 }
  0xce   : > { %744 = vmatpush.msra.mxu3 %v253_v56 }
  0xcf   : > { %697 = vmatpush.msrb.mxu2 %v640_v38  ;;  %v1034_v38 = vld [vmem:[%s1645_s3 + $0x91] ss:$0 sm:$0xff] }
  0xd0   : > { %745 = vmatpush.msra.mxu3 %v252_v57 }
  0xd1   : > { %953 = vmatmul.msk.f32.gmra.mxu0 %vm278_vm0, %v500_v21  ;;  %698 = vmatpush.msrb.mxu2 %v637_v25 }
  0xd2   : > { %746 = vmatpush.msra.mxu3 %v251_v6 }
  0xd3   : > { %699 = vmatpush.msrb.mxu2 %v634_v4 }
  0xd4   : > { %747 = vmatpush.msra.mxu3 %v250_v2 }
  0xd6   : > { %748 = vmatpush.msra.mxu3 %v249_v61 }
  0xd9   : > { %954 = vmatmul.msk.f32.gmra.mxu0 %vm278_vm0, %v501_v39 }
  0xe1   : > { %955 = vmatmul.msk.f32.gmra.mxu0 %vm278_vm0, %v502_v44 }
 0x126   : > { %v1493_v42 = vpop.f32.mrf.mxu0 }
 0x127   : > { %964 = vmatmul.msk.f32.vlgmr.msrb.gmra.mxu2 %vm659_vm14, %v1493_v42 }
 0x12e   : > { %v1497_v31 = vpop.f32.mrf.mxu0 }
 0x12f   : > { %965 = vmatmul.msk.f32.gmra.mxu2 %vm659_vm14, %v1497_v31 }
 0x136   : > { %v1501_v8 = vpop.f32.mrf.mxu0 }
 0x137   : > { %966 = vmatmul.msk.f32.gmra.mxu2 %vm659_vm14, %v1501_v8 }
 0x13e   : > { %v1505_v40 = vpop.f32.mrf.mxu0 }
 0x13f   : > { %967 = vmatmul.msk.f32.gmra.mxu2 %vm659_vm14, %v1505_v40 }
 0x146   : > { %v1524_v48 = vpop.f32.mrf.mxu0 }
 0x147   : > { %968 = vmatmul.msk.f32.gmra.mxu2 %vm659_vm14, %v1524_v48 }
 0x14e   : > { %v1540_v52 = vpop.f32.mrf.mxu0 }
 0x14f   : > { %969 = vmatmul.msk.f32.gmra.mxu2 %vm659_vm14, %v1540_v52 }
 0x156   : > { %v1556_v58 = vpop.f32.mrf.mxu0 }
 0x157   : > { %970 = vmatmul.msk.f32.gmra.mxu2 %vm659_vm14, %v1556_v58 }
 0x15e   : > { %v1560_v59 = vpop.f32.mrf.mxu0 }
 0x15f   : > { %971 = vmatmul.msk.f32.gmra.mxu2 %vm659_vm14, %v1560_v59 }
 0x1aa   : > { %v701_v62 = vpop.f32.mrf.mxu2 }
 0x1ab   : > { %v702_v3 = vadd.f32 %v1033_v11, %v701_v62 }
 0x1ad   : > { %v725_v55 = vmax.f32 %v702_v3, 0.0 }
 0x1af   : > { %749 = vmatmul.f32.vlgmr.msra.gmra.mxu3 %v725_v55 }
 0x1b2   : > { %v704_v4 = vpop.f32.mrf.mxu2 }
 0x1b3   : > { %v705_v63 = vadd.f32 %v1033_v11, %v704_v4 }
 0x1b5   : > { %v726_v9 = vmax.f32 %v705_v63, 0.0 }
 0x1b7   : > { %752 = vmatmul.f32.gmra.mxu3 %v726_v9 }
 0x1ba   : > { %v707_v10 = vpop.f32.mrf.mxu2 }
 0x1bb   : > { %v708_v17 = vadd.f32 %v1033_v11, %v707_v10 }
 0x1bd   : > { %v727_v18 = vmax.f32 %v708_v17, 0.0 }
 0x1bf   : > { %755 = vmatmul.f32.gmra.mxu3 %v727_v18 }
 0x1c2   : > { %v710_v19 = vpop.f32.mrf.mxu2 }
 0x1c3   : > { %v711_v20 = vadd.f32 %v1033_v11, %v710_v19 }
 0x1c5   : > { %v728_v15 = vmax.f32 %v711_v20, 0.0 }
 0x1c7   : > { %758 = vmatmul.f32.gmra.mxu3 %v728_v15 }
 0x1ca   : > { %v713_v22 = vpop.f32.mrf.mxu2 }
 0x1cb   : > { %v714_v23 = vadd.f32 %v1033_v11, %v713_v22 }
 0x1cd   : > { %v729_v5 = vmax.f32 %v714_v23, 0.0 }
 0x1cf   : > { %761 = vmatmul.f32.gmra.mxu3 %v729_v5 }
 0x1d2   : > { %v716_v14 = vpop.f32.mrf.mxu2 }
 0x1d3   : > { %v717_v24 = vadd.f32 %v1033_v11, %v716_v14 }
 0x1d5   : > { %v730_v37 = vmax.f32 %v717_v24, 0.0 }
 0x1d7   : > { %764 = vmatmul.f32.gmra.mxu3 %v730_v37 }
 0x1da   : > { %v719_v25 = vpop.f32.mrf.mxu2 }
 0x1db   : > { %v720_v26 = vadd.f32 %v1033_v11, %v719_v25 }
 0x1dd   : > { %v731_v27 = vmax.f32 %v720_v26, 0.0 }
 0x1df   : > { %767 = vmatmul.f32.gmra.mxu3 %v731_v27 }
 0x1e2   : > { %v722_v28 = vpop.f32.mrf.mxu2 }
 0x1e3   : > { %v723_v60 = vadd.f32 %v1033_v11, %v722_v28 }
 0x1e5   : > { %v732_v29 = vmax.f32 %v723_v60, 0.0 }
 0x1e7   : > { %770 = vmatmul.f32.gmra.mxu3 %v732_v29 }
 0x232   : > { %v750_v30 = vpop.f32.mrf.mxu3 }
 0x23a   : > { %v753_v21 = vpop.f32.mrf.mxu3 }
 0x242   : > { %v756_v7 = vpop.f32.mrf.mxu3 }
 0x24a   : > { %v759_v12 = vpop.f32.mrf.mxu3 }
 0x252   : > { %v762_v32 = vpop.f32.mrf.mxu3 }
 0x25a   : > { %v765_v34 = vpop.f32.mrf.mxu3 }
 0x262   : > { %v768_v0 = vpop.f32.mrf.mxu3 }
 0x26a   : > { %v771_v36 = vpop.f32.mrf.mxu3 }
 0x26b   : > { %783 = vmatpush.msrb.mxu1 %v771_v36 }
 0x26d   : > { %784 = vmatpush.msrb.mxu1 %v768_v0 }
 0x26f   : > { %785 = vmatpush.msrb.mxu1 %v765_v34 }
 0x271   : > { %786 = vmatpush.msrb.mxu1 %v762_v32 }
 0x273   : > { %787 = vmatpush.msrb.mxu1 %v759_v12 }
 0x275   : > { %788 = vmatpush.msrb.mxu1 %v756_v7 }
 0x277   : > { %789 = vmatpush.msrb.mxu1 %v753_v21 }
 0x279   : > { %790 = vmatpush.msrb.mxu1 %v750_v30 }
 0x27a   : > { %972 = vmatmul.msk.f32.vlgmr.msrb.gmra.mxu1 %vm659_vm14, %v1493_v42 }
 0x282   : > { %973 = vmatmul.msk.f32.gmra.mxu1 %vm659_vm14, %v1497_v31 }
 0x28a   : > { %974 = vmatmul.msk.f32.gmra.mxu1 %vm659_vm14, %v1501_v8 }
 0x292   : > { %975 = vmatmul.msk.f32.gmra.mxu1 %vm659_vm14, %v1505_v40 }
 0x29a   : > { %976 = vmatmul.msk.f32.gmra.mxu1 %vm659_vm14, %v1524_v48 }
 0x2a2   : > { %977 = vmatmul.msk.f32.gmra.mxu1 %vm659_vm14, %v1540_v52 }
 0x2aa   : > { %978 = vmatmul.msk.f32.gmra.mxu1 %vm659_vm14, %v1556_v58 }
 0x2b2   : > { %979 = vmatmul.msk.f32.gmra.mxu1 %vm659_vm14, %v1560_v59 }
 0x2f7   : > { %v792_v35 = vpop.f32.mrf.mxu1 }
 0x2f8   : > { %v793_v39 = vadd.f32 %v1034_v38, %v792_v35 }
 0x2fa   : > { %v816_v41 = vmax.f32 %v793_v39, 0.0 }
 0x2fc   : > { %824 = vst [vmem:[%s1598_s29] sm:$0xff] %v816_v41 }
 0x2ff   : > { %v795_v43 = vpop.f32.mrf.mxu1 }
 0x300   : > { %v796_v44 = vadd.f32 %v1034_v38, %v795_v43 }
 0x302   : > { %v817_v16 = vmax.f32 %v796_v44, 0.0 }
 0x304   : > { %825 = vst [vmem:[%s1598_s29 + $0x8] sm:$0xff] %v817_v16 }
 0x307   : > { %v798_v42 = vpop.f32.mrf.mxu1 }
 0x308   : > { %v799_v31 = vadd.f32 %v1034_v38, %v798_v42 }
 0x30a   : > { %v818_v8 = vmax.f32 %v799_v31, 0.0 }
 0x30c   : > { %826 = vst [vmem:[%s1598_s29 + $0x10] sm:$0xff] %v818_v8 }
 0x30f   : > { %v801_v40 = vpop.f32.mrf.mxu1 }
 0x310   : > { %v802_v1 = vadd.f32 %v1034_v38, %v801_v40 }
 0x312   : > { %v819_v45 = vmax.f32 %v802_v1, 0.0 }
 0x314   : > { %827 = vst [vmem:[%s1598_s29 + $0x18] sm:$0xff] %v819_v45 }
 0x317   : > { %v804_v46 = vpop.f32.mrf.mxu1 }
 0x318   : > { %v805_v47 = vadd.f32 %v1034_v38, %v804_v46 }
 0x31a   : > { %v820_v13 = vmax.f32 %v805_v47, 0.0 }
 0x31c   : > { %828 = vst [vmem:[%s1598_s29 + $0x20] sm:$0xff] %v820_v13 }
 0x31f   : > { %v807_v48 = vpop.f32.mrf.mxu1 }
 0x320   : > { %v808_v49 = vadd.f32 %v1034_v38, %v807_v48 }
 0x322   : > { %v821_v33 = vmax.f32 %v808_v49, 0.0 }
 0x324   : > { %829 = vst [vmem:[%s1598_s29 + $0x28] sm:$0xff] %v821_v33 }
 0x327   : > { %v810_v50 = vpop.f32.mrf.mxu1 }
 0x328   : > { %v811_v51 = vadd.f32 %v1034_v38, %v810_v50 }
 0x32a   : > { %v822_v52 = vmax.f32 %v811_v51, 0.0 }
 0x32c   : > { %830 = vst [vmem:[%s1598_s29 + $0x30] sm:$0xff] %v822_v52 }
 0x32f   : > { %v813_v53 = vpop.f32.mrf.mxu1 }
 0x330   : > { %v814_v54 = vadd.f32 %v1034_v38, %v813_v53 }
 0x332   : > { %v823_v56 = vmax.f32 %v814_v54, 0.0 }
 0x334   : > { %831 = vst [vmem:[%s1598_s29 + $0x38] sm:$0xff] %v823_v56 }
 0x335   : > { %1080 = shalt.err (!%p1077_p3)
}
 0x336   : > { %s1118_s22 = smov 128   ;;  %s1119_s27 = smov 8  }
 0x337   : > { %990 = dma.vmem_to_hbm [thread:$0]  (%p1183_p5), %s846_s8, 1024, %s848_s9, %s833_s10, %s1118_s22, %s1118_s22, %s1119_s27  }
 0x338 PF: > { %p996_p4 = scmp.ge.s32.totalorder %s1115_s18, 2  ;;  %s862_s28 = sand.u32 1, %s1103_s15  }
 0x339   : > { %s863_s29 = scalar_lea.sflag [#allocation3], %s862_s28 }
 0x33a   : > { %p993_p7 = pnand %p996_p4, %p1187_p6 }
 0x33c   : > { %p994_p8 = pneg %p993_p7 }
 0x33e   : > { %1098 = dma.done.wait (%p994_p8), %s863_s29, 1024  }
 0x33f   : > { %1100 = vsyncadd (%p994_p8), %s863_s29, 4294966272  ;;  %p14_p9 = scmp.ge.s32.totalorder %s1170_s21, 6   ;;  %s1659_s15 = smov %s1107_s16 }
 0x340   : > { %s1660_s16 = smov %s1111_s17  ;;  %s1661_s17 = smov %s1181_s24 }
 0x341   : > { %s1662_s18 = smov %s1170_s21  ;;  %16 = sbr.rel (!%p14_p9) target bundleno = 3 (0x3), region = 77 }
 0x346   :  { %869 = vsyncpa [#allocation3], 1 }
 0x347   :  { %871 = vsyncpa [#allocation3 + $0x1], 1 }

</bundles_post_ra>
